<compile_context>
chip_gen: v5e
topology: v5e:2x2
jax: 0.10.0
libtpu: 0.0.40
codegen_flags: <defaults>
</compile_context>

<pallas_src>
import math

import jax
import jax.numpy as jnp
from jax.experimental import pallas as pl
from jax.experimental.pallas import tpu as pltpu


_GELU_C = math.sqrt(2.0 / math.pi)


def _gelu_tanh_f32(x):
    # GELU with tanh approximation (matches nn.GELU(approximate='tanh')).
    return 0.5 * x * (1.0 + jnp.tanh(_GELU_C * (x + 0.044715 * x * x * x)))


def mlp_kernel(x_ref, wfc_ref, bfc_ref, wproj_ref, bproj_ref, o_ref, acc_ref):
    j = pl.program_id(1)

    @pl.when(j == 0)
    def _():
        acc_ref[...] = jnp.zeros_like(acc_ref)

    # First linear on this hidden chunk: (tm, C) @ (C, th) -> f32 (tm, th).
    # Operands stay in their native dtype; MXU accumulates in f32.
    h = jnp.dot(x_ref[...], wfc_ref[...], preferred_element_type=jnp.float32)
    h = h + bfc_ref[...].astype(jnp.float32)
    h = _gelu_tanh_f32(h)                                  # f32, tanh on EUP

    # Projection for this chunk, accumulated over hidden chunks.
    # Downcast h to the weight dtype so the MXU runs its native (bf16) path.
    acc_ref[...] += jnp.dot(h.astype(wproj_ref.dtype), wproj_ref[...],
                            preferred_element_type=jnp.float32)

    @pl.when(j == pl.num_programs(1) - 1)
    def _():
        out = acc_ref[...] + bproj_ref[...].astype(jnp.float32)
        o_ref[...] = out.astype(o_ref.dtype)


def _pick_tile(n, candidates):
    for c in candidates:
        if c <= n and n % c == 0:
            return c
    return n


def mlp_forward(x, wfc_t, b_fc, wproj_t, b_proj, *, tm=None, th=None):
    """Fused GPT-2 MLP forward.

    x:       (B, T, C)
    wfc_t:   (C, 4C)   == c_fc.weight.T   (stored pre-transposed, no per-call transpose)
    b_fc:    (4C,)
    wproj_t: (4C, C)   == c_proj.weight.T (stored pre-transposed)
    b_proj:  (C,)
    Returns (B, T, C) in x.dtype.
    """
    B, T, C = x.shape
    H = wfc_t.shape[1]
    assert wfc_t.shape == (C, H)
    assert wproj_t.shape == (H, C)
    M = B * T

    # Lane-density / MXU tiling constraints: keep last dims multiples of 128
    # so output stores are unmasked and MXU tiles are full.
    assert C % 128 == 0, f"n_embd={C} must be a multiple of 128"
    assert H % 128 == 0, f"hidden={H} must be a multiple of 128"

    if tm is None:
        # MXU-edge aligned row tile (128 on v5e, fine on v6e/v7x too); >1 grid
        # step along M restores pipelining and v7x dual-TC sharding.
        tm = _pick_tile(M, (512, 256, 128, 64, 32, 16, 8))
    if th is None:
        # Hidden-dim chunk: bounds VMEM to O(tm*C + 2*C*th) regardless of model size.
        th = _pick_tile(H, (1024, 512, 256, 128))
    assert M % tm == 0 and H % th == 0

    x2 = x.reshape(M, C)
    bfc2 = b_fc.reshape(1, H)
    bproj2 = b_proj.reshape(1, C)

    grid = (M // tm, H // th)
    out2 = pl.pallas_call(
        mlp_kernel,
        out_shape=jax.ShapeDtypeStruct((M, C), x.dtype),
        grid_spec=pltpu.PrefetchScalarGridSpec(
            num_scalar_prefetch=0,
            grid=grid,
            in_specs=[
                pl.BlockSpec((tm, C), lambda i, j: (i, 0)),   # x rows (resident over j)
                pl.BlockSpec((C, th), lambda i, j: (0, j)),   # W_fc^T hidden chunk (streamed)
                pl.BlockSpec((1, th), lambda i, j: (0, j)),   # b_fc chunk
                pl.BlockSpec((th, C), lambda i, j: (j, 0)),   # W_proj^T hidden chunk (streamed)
                pl.BlockSpec((1, C), lambda i, j: (0, 0)),    # b_proj
            ],
            out_specs=pl.BlockSpec((tm, C), lambda i, j: (i, 0)),
            scratch_shapes=[pltpu.VMEM((tm, C), jnp.float32)],
        ),
        compiler_params=pltpu.CompilerParams(
            dimension_semantics=("parallel", "arbitrary")),
    )(x2, wfc_t, bfc2, wproj_t, bproj2)
    return out2.reshape(B, T, C)


def _reference(x, wfc_t, b_fc, wproj_t, b_proj):
    # Pure-JAX reference in f32.
    xf = x.astype(jnp.float32)
    h = jnp.einsum("btc,ch->bth", xf, wfc_t.astype(jnp.float32)) \
        + b_fc.astype(jnp.float32)
    h = _gelu_tanh_f32(h)
    return jnp.einsum("bth,hc->btc", h, wproj_t.astype(jnp.float32)) \
        + b_proj.astype(jnp.float32)


if __name__ == "__main__":
    # Small but lane-aligned config: n_embd=128, batch=2, seq=64 -> hidden=512.
    B, T, C = 2, 64, 128
    H = 4 * C

    key = jax.random.PRNGKey(0)
    kx, k1, k2, k3, k4 = jax.random.split(key, 5)

    x = jax.random.normal(kx, (B, T, C), dtype=jnp.float32)
    # Weights stored pre-transposed (kernel-ready). The equivalent PyTorch
    # nn.Linear weights would be wfc_t.T (shape (4C, C)) and wproj_t.T ((C, 4C)).
    wfc_t = jax.random.normal(k1, (C, H), dtype=jnp.float32) * 0.02
    b_fc = jax.random.normal(k2, (H,), dtype=jnp.float32) * 0.02
    wproj_t = jax.random.normal(k3, (H, C), dtype=jnp.float32) * 0.02
    b_proj = jax.random.normal(k4, (C,), dtype=jnp.float32) * 0.02

    # --- f32 path (th=256 forces 2 hidden chunks -> exercises accumulation) ---
    out = mlp_forward(x, wfc_t, b_fc, wproj_t, b_proj, th=256)
    out = jax.block_until_ready(out)
    ref = _reference(x, wfc_t, b_fc, wproj_t, b_proj)
    assert out.shape == (B, T, C)
    assert jnp.allclose(out, ref, atol=1e-4, rtol=1e-4), "f32 mismatch vs reference"

    # --- bf16 path (native MXU dtype, f32 accumulation), looser tolerance ---
    x_bf = x.astype(jnp.bfloat16)
    wfc_bf = wfc_t.astype(jnp.bfloat16)
    bfc_bf = b_fc.astype(jnp.bfloat16)
    wproj_bf = wproj_t.astype(jnp.bfloat16)
    bproj_bf = b_proj.astype(jnp.bfloat16)
    out_bf = mlp_forward(x_bf, wfc_bf, bfc_bf, wproj_bf, bproj_bf, th=256)
    out_bf = jax.block_until_ready(out_bf)
    ref_bf = _reference(x_bf, wfc_bf, bfc_bf, wproj_bf, bproj_bf)
    assert jnp.allclose(out_bf.astype(jnp.float32), ref_bf, atol=2e-2, rtol=2e-2), \
        "bf16 mismatch vs f32 reference"

    print("KERNEL_OK")
</pallas_src>

<mosaic_0001>
module attributes {stable_mosaic.version = 11 : i64} {
  func.func @mlp_kernel(%arg0: i32, %arg1: i32, %arg2: memref<128x128xf32, #tpu.memory_space<vmem>>, %arg3: memref<128x256xf32, #tpu.memory_space<vmem>>, %arg4: memref<1x256xf32, #tpu.memory_space<vmem>>, %arg5: memref<256x128xf32, #tpu.memory_space<vmem>>, %arg6: memref<1x128xf32, #tpu.memory_space<vmem>>, %arg7: memref<128x128xf32, #tpu.memory_space<vmem>>, %arg8: memref<128x128xf32, #tpu.memory_space<vmem>>) attributes {dimension_semantics = [#tpu.dimension_semantics<parallel>, #tpu.dimension_semantics<arbitrary>], iteration_bounds = array<i64: 1, 2>, scalar_prefetch = 0 : i64, scratch_operands = 1 : i64, tpu.core_type = #tpu.core_type<tc>, window_params = [{transform_indices = @transform_0, window_bounds = array<i64: 128, 128>}, {transform_indices = @transform_1, window_bounds = array<i64: 128, 256>}, {transform_indices = @transform_2, window_bounds = array<i64: 1, 256>}, {transform_indices = @transform_3, window_bounds = array<i64: 256, 128>}, {pipeline_mode = #tpu.pipeline_mode<synchronous>, transform_indices = @transform_4, window_bounds = array<i64: 1, 128>}, {transform_indices = @transform_5, window_bounds = array<i64: 128, 128>}]} {
    %c0_i32 = arith.constant 0 : i32
    %0 = arith.cmpi eq, %arg1, %c0_i32 : i32
    %1 = arith.extui %0 : i1 to i32
    %c0_i32_0 = arith.constant 0 : i32
    %2 = arith.cmpi ne, %1, %c0_i32_0 : i32
    scf.if %2 {
      %cst_18 = arith.constant 0.000000e+00 : f32
      %30 = vector.broadcast %cst_18 : f32 to vector<128x128xf32>
      %c0_19 = arith.constant 0 : index
      %c0_20 = arith.constant 0 : index
      %31 = vector.load %arg8[%c0_19, %c0_20] : memref<128x128xf32, #tpu.memory_space<vmem>>, vector<128x128xf32>
      tpu.vector_store %arg8[%c0_19, %c0_20], %30 {strides = array<i32>} : memref<128x128xf32, #tpu.memory_space<vmem>>, vector<128x128xf32>,
    } else {
    }
    %c0 = arith.constant 0 : index
    %c0_1 = arith.constant 0 : index
    %3 = vector.load %arg2[%c0, %c0_1] : memref<128x128xf32, #tpu.memory_space<vmem>>, vector<128x128xf32>
    %c0_2 = arith.constant 0 : index
    %c0_3 = arith.constant 0 : index
    %4 = vector.load %arg3[%c0_2, %c0_3] : memref<128x256xf32, #tpu.memory_space<vmem>>, vector<128x256xf32>
    %cst = arith.constant dense<0.000000e+00> : vector<128x256xf32>
    %5 = tpu.matmul %3, %4, %cst {dimension_numbers = #tpu.dot_dimension_numbers<[1], [0], [0], [1], [0, 0, 1, 1], [], []>} : vector<128x128xf32>, vector<128x256xf32>, vector<128x256xf32> -> vector<128x256xf32>
    %c0_4 = arith.constant 0 : index
    %c0_5 = arith.constant 0 : index
    %6 = vector.load %arg4[%c0_4, %c0_5] : memref<1x256xf32, #tpu.memory_space<vmem>>, vector<1x256xf32>
    %7 = vector.broadcast %6 : vector<1x256xf32> to vector<128x256xf32>
    %8 = arith.addf %5, %7 : vector<128x256xf32>
    %cst_6 = arith.constant 5.000000e-01 : f32
    %9 = vector.broadcast %cst_6 : f32 to vector<128x256xf32>
    %10 = arith.mulf %9, %8 : vector<128x256xf32>
    %cst_7 = arith.constant 4.471500e-02 : f32
    %11 = vector.broadcast %cst_7 : f32 to vector<128x256xf32>
    %12 = arith.mulf %11, %8 : vector<128x256xf32>
    %13 = arith.mulf %12, %8 : vector<128x256xf32>
    %14 = arith.mulf %13, %8 : vector<128x256xf32>
    %15 = arith.addf %8, %14 : vector<128x256xf32>
    %cst_8 = arith.constant 0.797884583 : f32
    %16 = vector.broadcast %cst_8 : f32 to vector<128x256xf32>
    %17 = arith.mulf %16, %15 : vector<128x256xf32>
    %18 = math.tanh %17 : vector<128x256xf32>
    %cst_9 = arith.constant 1.000000e+00 : f32
    %19 = vector.broadcast %cst_9 : f32 to vector<128x256xf32>
    %20 = arith.addf %19, %18 : vector<128x256xf32>
    %21 = arith.mulf %10, %20 : vector<128x256xf32>
    %c0_10 = arith.constant 0 : index
    %c0_11 = arith.constant 0 : index
    %22 = vector.load %arg8[%c0_10, %c0_11] : memref<128x128xf32, #tpu.memory_space<vmem>>, vector<128x128xf32>
    %c0_12 = arith.constant 0 : index
    %c0_13 = arith.constant 0 : index
    %23 = vector.load %arg5[%c0_12, %c0_13] : memref<256x128xf32, #tpu.memory_space<vmem>>, vector<256x128xf32>
    %cst_14 = arith.constant dense<0.000000e+00> : vector<128x128xf32>
    %24 = tpu.matmul %21, %23, %cst_14 {dimension_numbers = #tpu.dot_dimension_numbers<[1], [0], [0], [1], [0, 0, 1, 1], [], []>} : vector<128x256xf32>, vector<256x128xf32>, vector<128x128xf32> -> vector<128x128xf32>
    %25 = arith.addf %22, %24 : vector<128x128xf32>
    %c0_15 = arith.constant 0 : index
    %c0_16 = arith.constant 0 : index
    %26 = vector.load %arg8[%c0_15, %c0_16] : memref<128x128xf32, #tpu.memory_space<vmem>>, vector<128x128xf32>
    tpu.vector_store %arg8[%c0_15, %c0_16], %25 {strides = array<i32>} : memref<128x128xf32, #tpu.memory_space<vmem>>, vector<128x128xf32>,
    %c1_i32 = arith.constant 1 : i32
    %27 = arith.cmpi eq, %arg1, %c1_i32 : i32
    %28 = arith.extui %27 : i1 to i32
    %c0_i32_17 = arith.constant 0 : i32
    %29 = arith.cmpi ne, %28, %c0_i32_17 : i32
    scf.if %29 {
      %c0_18 = arith.constant 0 : index
      %c0_19 = arith.constant 0 : index
      %30 = vector.load %arg8[%c0_18, %c0_19] : memref<128x128xf32, #tpu.memory_space<vmem>>, vector<128x128xf32>
      %c0_20 = arith.constant 0 : index
      %c0_21 = arith.constant 0 : index
      %31 = vector.load %arg6[%c0_20, %c0_21] : memref<1x128xf32, #tpu.memory_space<vmem>>, vector<1x128xf32>
      %32 = vector.broadcast %31 : vector<1x128xf32> to vector<128x128xf32>
      %33 = arith.addf %30, %32 : vector<128x128xf32>
      %c0_22 = arith.constant 0 : index
      %c0_23 = arith.constant 0 : index
      %34 = vector.load %arg7[%c0_22, %c0_23] : memref<128x128xf32, #tpu.memory_space<vmem>>, vector<128x128xf32>
      tpu.vector_store %arg7[%c0_22, %c0_23], %33 {strides = array<i32>} : memref<128x128xf32, #tpu.memory_space<vmem>>, vector<128x128xf32>,
    } else {
    }
    return
  }
  func.func @transform_0(%arg0: i32, %arg1: i32) -> (i32, i32) {
    %c0_i32 = arith.constant 0 : i32
    %c0_i32_0 = arith.constant 0 : i32
    return %arg0, %c0_i32 : i32, i32
  }
  func.func @transform_1(%arg0: i32, %arg1: i32) -> (i32, i32) {
    %c0_i32 = arith.constant 0 : i32
    %c0_i32_0 = arith.constant 0 : i32
    return %c0_i32, %arg1 : i32, i32
  }
  func.func @transform_2(%arg0: i32, %arg1: i32) -> (i32, i32) {
    %c0_i32 = arith.constant 0 : i32
    %c0_i32_0 = arith.constant 0 : i32
    return %c0_i32, %arg1 : i32, i32
  }
  func.func @transform_3(%arg0: i32, %arg1: i32) -> (i32, i32) {
    %c0_i32 = arith.constant 0 : i32
    %c0_i32_0 = arith.constant 0 : i32
    return %arg1, %c0_i32 : i32, i32
  }
  func.func @transform_4(%arg0: i32, %arg1: i32) -> (i32, i32) {
    %c0_i32 = arith.constant 0 : i32
    %c0_i32_0 = arith.constant 0 : i32
    %c0_i32_1 = arith.constant 0 : i32
    return %c0_i32, %c0_i32_0 : i32, i32
  }
  func.func @transform_5(%arg0: i32, %arg1: i32) -> (i32, i32) {
    %c0_i32 = arith.constant 0 : i32
    %c0_i32_0 = arith.constant 0 : i32
    return %arg0, %c0_i32 : i32, i32
  }
}

</mosaic_0001>

<bundles_post_ra>
// kernel: tpu_custom_call.1
= control target key start
LH: loop header
LB: loop body
LE: loop exit
PB: predicated region body
PF: predicated region fallthrough
CT: control target
= control target key end

     0   :  { %s2056_s0 = inlined_call_operand.hbm [shape: f32[128,128], index: 0, kind: input, shape index: {}]   ;;  %s2057_s1 = inlined_call_operand.hbm [shape: f32[128,512], index: 1, kind: input, shape index: {}]   ;;  %s2058_s2 = inlined_call_operand.hbm [shape: f32[1,512], index: 2, kind: input, shape index: {}]   ;;  %s2059_s3 = inlined_call_operand.hbm [shape: f32[512,128], index: 3, kind: input, shape index: {}]   ;;  %s2060_s4 = inlined_call_operand.vmem [shape: f32[1,128], index: 4, kind: input, shape index: {}]   ;;  %s2061_s5 = inlined_call_operand.hbm [shape: f32[128,128], index: 5, kind: output, shape index: {}]  }
   0x1   :  { %2066 = sst [smem:[#allocation20_spill]] %s2056_s0 }
   0x2   :  { %2067 = sst [smem:[#allocation21_spill]] %s2057_s1 }
   0x3   :  { %10 = vsyncpa [#allocation4], 0 }
   0x4   :  { %11 = vsyncpa [#allocation7], 0 }
   0x5   :  { %13 = vsyncpa [#allocation7 + $0x1], 0 }
   0x6   :  { %14 = vsyncpa [#allocation10], 0 }
   0x7   :  { %16 = vsyncpa [#allocation10 + $0x1], 0 }
   0x8   :  { %17 = vsyncpa [#allocation5], 0  ;;  %s1681_s18 = smov 0   ;;  %s1683_s19 = smov 0  }
   0x9   :  { %s1685_s20 = smov 0   ;;  %s1687_s21 = smov 0  }
   0xa   :  { %s1689_s22 = smov 0   ;;  %s1691_s23 = smov 0  }
   0xb LB: > { %2068 = sst [smem:[#allocation16_spill]] %s1627_s20  ;;  %s32_s24 = sadd.s32 1, %s1635_s22  ;;  %s1639_s23 = sphi %s1691_s23, %s23_s23   ;;  %s1635_s22 = sphi %s1689_s22, %s2086_s22   ;;  %s1631_s21 = sphi %s1687_s21, %s2085_s21   ;;  %s1627_s20 = sphi %s1685_s20, %s2081_s20   ;;  %s1623_s19 = sphi %s1683_s19, %s2084_s19   ;;  %s1619_s18 = sphi %s1681_s18, %s2083_s18  }
   0xc   : > { %2069 = sst [smem:[#allocation17_spill]] %s1639_s23  ;;  %s68_s25 = sadd.s32 1, %s1627_s20 }
   0xd   : > { %p33_p0 = scmp.ge.s32.totalorder %s32_s24, 2  ;;  %p75_p1 = scmp.ne.s32.totalorder %s1627_s20, %s1623_s19 }
   0xe   : > { %p76_p2 = scmp.eq.s32.totalorder %s1639_s23, 0  ;;  %p1302_p4 = scmp.lt.s32.totalorder %s1639_s23, 2 }
   0xf   : > { %s2088_s24 = smov (%p33_p0, %s32_s24), 0  ;;  %s224_s28 = sand.u32 1, %s1639_s23  }
  0x10   : > { %2070 = sst [smem:[#allocation18_spill]] %s2088_s24  ;;  %p1718_p3 = por %p76_p2, %p75_p1 }
  0x11   : > { %s65_s27 = ssub.s32 %s1635_s22, %s2088_s24  ;;  %s1727_s29 = sand.u32 1, %s1627_s20  }
  0x12   : > { %p66_p5 = scmp.eq.s32.totalorder %s65_s27, 0  ;;  %s1271_s30 = sshll.u32 %s1635_s22, 4 }
  0x13   : > { %s2062_s7 = sshll.u32 %s1727_s29, 8  ;;  %s2073_s1 = sld [smem:[#allocation21_spill]] }
  0x14   : > { %s1731_s6 = scalar_select %p66_p5, %s1627_s20, %s68_s25  }
  0x15   : > { %s228_s12 = scalar_lea.vmem [#allocation6], %s2062_s7  ;;  %p1743_p6 = pnand %p1302_p4, %p1718_p3 }
  0x16   : > { %2072 = sst [smem:[#allocation19_spill]] %s1731_s6  ;;  %s236_s13 = sshll.u32 %s228_s12, 4  ;;  %s237_s13 = int_to_ptr.vmem [resolvable:$true] %s236_s13 }
  0x17   : > { %s1747_s15 = scalar_lea.sflag [#allocation7], %s224_s28  ;;  %s1641_s16 = smov 512  }
  0x18   : > { %s1642_s17 = smov 256   ;;  %s1643_s25 = smov 16  }
  0x19   : > { %s233_s10 = scalar_lea.hbm %s2073_s1, %s1271_s30  ;;  %s1753_s27 = sadd.s32 4294967295, %s1639_s23  }
  0x1a   : > { %s234_s11 = sshll.u32 %s233_s10, 4  ;;  %p81_p7 = scmp.ne.s32.totalorder %s1623_s19, %s1619_s18  ;;  %s235_s11 = int_to_ptr.hbm [resolvable:$true] %s234_s11 }
  0x1b   : > { %1294 = dma.hbm_to_vmem [thread:$0]  (!%p1743_p6), %s235_s11, 4096, %s237_s13, %s1747_s15, %s1641_s16, %s1642_s17, %s1643_s25  }
  0x1c   : > { %p82_p8 = scmp.eq.s32.totalorder %s1753_s27, 0  ;;  %p1249_p9 = scmp.ge.s32.totalorder %s1639_s23, 1 }
  0x1d   : > { %p191_p10 = scmp.lt.s32.totalorder %s1639_s23, 3  ;;  %s2076_s0 = sld [smem:[#allocation20_spill]] }
  0x1e   : > { %p1762_p11 = por %p82_p8, %p81_p7  ;;  %s1644_s18 = smov [#allocation3]  }
  0x1f   : > { %p1769_p12 = pnand %p1249_p9, %p191_p10  ;;  %s207_s10 = sshll.u32 %s1644_s18, 4  ;;  %s208_s10 = int_to_ptr.vmem [resolvable:$true] %s207_s10 }
  0x20   : > { %s1255_s11 = sshll.u32 %s1727_s29, 1  ;;  %s1256_s12 = sshll.u32 %s1635_s22, 1 }
  0x21   : > { %p1287_p13 = pneg %p1769_p12  ;;  %s254_s17 = scalar_lea.hbm %s2058_s2, %s1256_s12 }
  0x22   : > { %s1645_s25 = smov 128   ;;  %s1646_s28 = smov 8  }
  0x23   : > { %s205_s8 = sshll.u32 %s2076_s0, 4  ;;  %p1288_p0 = pnand %p1287_p13, %p82_p8  ;;  %s206_s8 = int_to_ptr.hbm [resolvable:$true] %s205_s8 }
  0x24   : > { %s256_s30 = sshll.u32 %s254_s17, 4  ;;  %s250_s7 = scalar_lea.vmem [#allocation8], %s1255_s11  ;;  %s257_s30 = int_to_ptr.hbm [resolvable:$true] %s256_s30 }
  0x25   : > { %1290 = dma.hbm_to_vmem [thread:$0]  (!%p1288_p0), %s206_s8, 2048, %s208_s10, [#allocation4], %s1645_s25, %s1645_s25, %s1646_s28  }
  0x26   : > { %s258_s0 = sshll.u32 %s250_s7, 4  ;;  %s1272_s18 = sshll.u32 %s1635_s22, 8  ;;  %s259_s0 = int_to_ptr.vmem [resolvable:$true] %s258_s0 }
  0x27   : > { %1297 = dma.hbm_to_vmem [thread:$0]  (!%p1743_p6), %s257_s30, 32, %s259_s0, %s1747_s15  }
  0x28   : > { %s2078_s1 = sshll.u32 %s1727_s29, 8  ;;  %s274_s12 = scalar_lea.hbm %s2059_s3, %s1272_s18 }
  0x29   : > { %s269_s24 = scalar_lea.vmem [#allocation9], %s2078_s1  ;;  %s275_s13 = sshll.u32 %s274_s12, 4  ;;  %s276_s13 = int_to_ptr.hbm [resolvable:$true] %s275_s13 }
  0x2a   : > { %s277_s6 = sshll.u32 %s269_s24, 4  ;;  %s266_s16 = scalar_lea.sflag [#allocation10], %s1727_s29  ;;  %s278_s6 = int_to_ptr.vmem [resolvable:$true] %s277_s6 }
  0x2b   : > { %1300 = dma.hbm_to_vmem [thread:$0]  (!%p1743_p6), %s276_s13, 4096, %s278_s6, %s266_s16, %s1645_s25, %s1645_s25, %s1646_s28  }
  0x2c   : > { %289 = sbr.rel (%p1769_p12) target bundleno = 545 (0x221), region = 40 }
  0x31   : > { %1602 = dma.done.wait (%p82_p8), [#allocation4], 2048  }
  0x32   : > { %1604 = vsyncadd (%p82_p8), [#allocation4], 4294965248  ;;  %s296_s0 = sand.u32 1, %s1753_s27   ;;  %s298_s1 = sand.u32 1, %s1623_s19  }
  0x33   : > { %s1262_s20 = sshll.u32 %s298_s1, 8  ;;  %s297_s23 = scalar_lea.sflag [#allocation7], %s296_s0 }
  0x34   : > { %s1802_s24 = scalar_lea.vmem [#allocation6], %s1262_s20 }
  0x35   : > { %1606 = dma.done.wait (%p1762_p11), %s297_s23, 4128  }
  0x36   : > { %1608 = vsyncadd (%p1762_p11), %s297_s23, 4294963168  ;;  %s1263_s29 = sshll.u32 %s298_s1, 1  ;;  %s317_s7 = scalar_lea.sflag [#allocation10], %s298_s1 }
  0x37   : > { %s1808_s6 = scalar_lea.vmem [#allocation8], %s1263_s29  ;;  %s1810_s14 = scalar_lea.vmem [#allocation9], %s1262_s20 }
  0x38   : > { %1610 = dma.done.wait (%p1762_p11), %s317_s7, 4096  }
  0x39   : > { %1612 = vsyncadd (%p1762_p11), %s317_s7, 4294963200  ;;  %p1265_p1 = scmp.ne.s32.totalorder %s1631_s21, 0 }
  0x3b   : > { %361 = sbr.rel (%p1265_p1) target bundleno = 81 (0x51), region = 60 }
  0x40   : > { %v1647_v0 = vmov 0.0  }
  0x41   : > { %362 = vst [vmem:[#allocation2 + $0x30] sm:$0xff] %v1647_v0 }
  0x42   : > { %363 = vst [vmem:[#allocation2] sm:$0xff] %v1647_v0 }
  0x43   : > { %364 = vst [vmem:[#allocation2 + $0x58] sm:$0xff] %v1647_v0 }
  0x44   : > { %365 = vst [vmem:[#allocation2 + $0x18] sm:$0xff] %v1647_v0 }
  0x45   : > { %366 = vst [vmem:[#allocation2 + $0x50] sm:$0xff] %v1647_v0 }
  0x46   : > { %367 = vst [vmem:[#allocation2 + $0x68] sm:$0xff] %v1647_v0 }
  0x47   : > { %368 = vst [vmem:[#allocation2 + $0x8] sm:$0xff] %v1647_v0 }
  0x48   : > { %369 = vst [vmem:[#allocation2 + $0x48] sm:$0xff] %v1647_v0 }
  0x49   : > { %370 = vst [vmem:[#allocation2 + $0x40] sm:$0xff] %v1647_v0 }
  0x4a   : > { %371 = vst [vmem:[#allocation2 + $0x20] sm:$0xff] %v1647_v0 }
  0x4b   : > { %372 = vst [vmem:[#allocation2 + $0x10] sm:$0xff] %v1647_v0 }
  0x4c   : > { %373 = vst [vmem:[#allocation2 + $0x38] sm:$0xff] %v1647_v0 }
  0x4d   : > { %374 = vst [vmem:[#allocation2 + $0x60] sm:$0xff] %v1647_v0 }
  0x4e   : > { %375 = vst [vmem:[#allocation2 + $0x70] sm:$0xff] %v1647_v0 }
  0x4f   : > { %376 = vst [vmem:[#allocation2 + $0x78] sm:$0xff] %v1647_v0 }
  0x50   : > { %377 = vst [vmem:[#allocation2 + $0x28] sm:$0xff] %v1647_v0 }
  0x51 PF: > { %v424_v1 = vld [vmem:[%s1802_s24 + $0xf0] sm:$0xff]  ;;  %v425_v2 = vld [vmem:[%s1802_s24 + $0xf8] sm:$0xff]  ;;  %v422_v3 = vld [vmem:[%s1802_s24 + $0xe0] sm:$0xff]  ;;  %p1266_p2 = scmp.ne.s32.totalorder %s1631_s21, 1 }
  0x52   : > { %432 = vmatpush.msra.mxu0 %v424_v1  ;;  %497 = vmatpush.msra.mxu1 %v425_v2  ;;  %v423_v4 = vld [vmem:[%s1802_s24 + $0xe8] sm:$0xff]  ;;  %v420_v5 = vld [vmem:[%s1802_s24 + $0xd0] sm:$0xff]  ;;  %v421_v6 = vld [vmem:[%s1802_s24 + $0xd8] sm:$0xff] }
  0x53   : > { %v418_v7 = vld [vmem:[%s1802_s24 + $0xc0] sm:$0xff]  ;;  %v419_v8 = vld [vmem:[%s1802_s24 + $0xc8] sm:$0xff]  ;;  %v416_v9 = vld [vmem:[%s1802_s24 + $0xb0] sm:$0xff] }
  0x54   : > { %433 = vmatpush.msra.mxu0 %v422_v3  ;;  %498 = vmatpush.msra.mxu1 %v423_v4  ;;  %v417_v10 = vld [vmem:[%s1802_s24 + $0xb8] sm:$0xff]  ;;  %v414_v11 = vld [vmem:[%s1802_s24 + $0xa0] sm:$0xff]  ;;  %v415_v12 = vld [vmem:[%s1802_s24 + $0xa8] sm:$0xff] }
  0x55   : > { %v412_v13 = vld [vmem:[%s1802_s24 + $0x90] sm:$0xff]  ;;  %v413_v14 = vld [vmem:[%s1802_s24 + $0x98] sm:$0xff]  ;;  %v410_v15 = vld [vmem:[%s1802_s24 + $0x80] sm:$0xff] }
  0x56   : > { %434 = vmatpush.msra.mxu0 %v420_v5  ;;  %499 = vmatpush.msra.mxu1 %v421_v6  ;;  %v411_v16 = vld [vmem:[%s1802_s24 + $0x88] sm:$0xff]  ;;  %v408_v17 = vld [vmem:[%s1802_s24 + $0x70] sm:$0xff]  ;;  %v409_v18 = vld [vmem:[%s1802_s24 + $0x78] sm:$0xff] }
  0x57   : > { %v406_v19 = vld [vmem:[%s1802_s24 + $0x60] sm:$0xff]  ;;  %v407_v20 = vld [vmem:[%s1802_s24 + $0x68] sm:$0xff]  ;;  %v404_v21 = vld [vmem:[%s1802_s24 + $0x50] sm:$0xff] }
  0x58   : > { %435 = vmatpush.msra.mxu0 %v418_v7  ;;  %500 = vmatpush.msra.mxu1 %v419_v8  ;;  %v405_v22 = vld [vmem:[%s1802_s24 + $0x58] sm:$0xff]  ;;  %v402_v23 = vld [vmem:[%s1802_s24 + $0x40] sm:$0xff]  ;;  %v403_v24 = vld [vmem:[%s1802_s24 + $0x48] sm:$0xff] }
  0x59   : > { %v400_v25 = vld [vmem:[%s1802_s24 + $0x30] sm:$0xff]  ;;  %v401_v26 = vld [vmem:[%s1802_s24 + $0x38] sm:$0xff]  ;;  %v398_v27 = vld [vmem:[%s1802_s24 + $0x20] sm:$0xff] }
  0x5a   : > { %436 = vmatpush.msra.mxu0 %v416_v9  ;;  %501 = vmatpush.msra.mxu1 %v417_v10  ;;  %v399_v28 = vld [vmem:[%s1802_s24 + $0x28] sm:$0xff]  ;;  %v396_v29 = vld [vmem:[%s1802_s24 + $0x10] sm:$0xff]  ;;  %v397_v30 = vld [vmem:[%s1802_s24 + $0x18] sm:$0xff] }
  0x5b   : > { %v394_v31 = vld [vmem:[%s1802_s24] sm:$0xff]  ;;  %v395_v32 = vld [vmem:[%s1802_s24 + $0x8] sm:$0xff]  ;;  %v380_v35 = vld [vmem:[#allocation3 + $0x10] sm:$0xff] }
  0x5c   : > { %437 = vmatpush.msra.mxu0 %v414_v11  ;;  %502 = vmatpush.msra.mxu1 %v415_v12  ;;  %v378_v33 = vld [vmem:[#allocation3] sm:$0xff]  ;;  %v379_v34 = vld [vmem:[#allocation3 + $0x8] sm:$0xff]  ;;  %v381_v36 = vld [vmem:[#allocation3 + $0x18] sm:$0xff] }
  0x5d   : > { %v382_v37 = vld [vmem:[#allocation3 + $0x20] sm:$0xff]  ;;  %v383_v38 = vld [vmem:[#allocation3 + $0x28] sm:$0xff]  ;;  %v384_v39 = vld [vmem:[#allocation3 + $0x30] sm:$0xff] }
  0x5e   : > { %438 = vmatpush.msra.mxu0 %v412_v13  ;;  %503 = vmatpush.msra.mxu1 %v413_v14  ;;  %v385_v40 = vld [vmem:[#allocation3 + $0x38] sm:$0xff]  ;;  %v386_v41 = vld [vmem:[#allocation3 + $0x40] sm:$0xff]  ;;  %v387_v42 = vld [vmem:[#allocation3 + $0x48] sm:$0xff] }
  0x5f   : > { %v388_v43 = vld [vmem:[#allocation3 + $0x50] sm:$0xff]  ;;  %v881_v44 = vld [vmem:[%s1810_s14 + $0x78] sm:$0xff]  ;;  %v878_v51 = vld [vmem:[%s1810_s14 + $0x60] sm:$0xff] }
  0x60   : > { %439 = vmatpush.msra.mxu0 %v410_v15  ;;  %504 = vmatpush.msra.mxu1 %v411_v16  ;;  %v897_v45 = vld [vmem:[%s1810_s14 + $0xf8] sm:$0xff]  ;;  %v880_v47 = vld [vmem:[%s1810_s14 + $0x70] sm:$0xff]  ;;  %v879_v49 = vld [vmem:[%s1810_s14 + $0x68] sm:$0xff] }
  0x61   : > { %898 = vmatpush.msra.mxu2 %v881_v44  ;;  %963 = vmatpush.msra.mxu3 %v897_v45  ;;  %v389_v46 = vld [vmem:[#allocation3 + $0x58] sm:$0xff]  ;;  %v895_v50 = vld [vmem:[%s1810_s14 + $0xe8] sm:$0xff]  ;;  %v894_v52 = vld [vmem:[%s1810_s14 + $0xe0] sm:$0xff] }
  0x62   : > { %440 = vmatpush.msra.mxu0 %v408_v17  ;;  %505 = vmatpush.msra.mxu1 %v409_v18  ;;  %v896_v48 = vld [vmem:[%s1810_s14 + $0xf0] sm:$0xff]  ;;  %v390_v53 = vld [vmem:[#allocation3 + $0x60] sm:$0xff]  ;;  %v875_v58 = vld [vmem:[%s1810_s14 + $0x48] sm:$0xff] }
  0x63   : > { %899 = vmatpush.msra.mxu2 %v880_v47  ;;  %964 = vmatpush.msra.mxu3 %v896_v48  ;;  %v877_v54 = vld [vmem:[%s1810_s14 + $0x58] sm:$0xff]  ;;  %v876_v56 = vld [vmem:[%s1810_s14 + $0x50] sm:$0xff]  ;;  %v891_v59 = vld [vmem:[%s1810_s14 + $0xc8] sm:$0xff] }
  0x64   : > { %441 = vmatpush.msra.mxu0 %v406_v19  ;;  %506 = vmatpush.msra.mxu1 %v407_v20  ;;  %v893_v55 = vld [vmem:[%s1810_s14 + $0xd8] sm:$0xff]  ;;  %v892_v57 = vld [vmem:[%s1810_s14 + $0xd0] sm:$0xff]  ;;  %v874_v60 = vld [vmem:[%s1810_s14 + $0x40] sm:$0xff] }
  0x65   : > { %900 = vmatpush.msra.mxu2 %v879_v49  ;;  %965 = vmatpush.msra.mxu3 %v895_v50  ;;  %v890_v61 = vld [vmem:[%s1810_s14 + $0xc0] sm:$0xff]  ;;  %v873_v63 = vld [vmem:[%s1810_s14 + $0x38] sm:$0xff]  ;;  %v872_v1 = vld [vmem:[%s1810_s14 + $0x30] sm:$0xff] }
  0x66   : > { %442 = vmatpush.msra.mxu0 %v404_v21  ;;  %507 = vmatpush.msra.mxu1 %v405_v22  ;;  %v391_v62 = vld [vmem:[#allocation3 + $0x68] sm:$0xff]  ;;  %v889_v0 = vld [vmem:[%s1810_s14 + $0xb8] sm:$0xff]  ;;  %v888_v2 = vld [vmem:[%s1810_s14 + $0xb0] sm:$0xff] }
  0x67   : > { %901 = vmatpush.msra.mxu2 %v878_v51  ;;  %966 = vmatpush.msra.mxu3 %v894_v52  ;;  %v871_v3 = vld [vmem:[%s1810_s14 + $0x28] sm:$0xff]  ;;  %v870_v5 = vld [vmem:[%s1810_s14 + $0x20] sm:$0xff]  ;;  %v869_v8 = vld [vmem:[%s1810_s14 + $0x18] sm:$0xff] }
  0x68   : > { %443 = vmatpush.msra.mxu0 %v402_v23  ;;  %508 = vmatpush.msra.mxu1 %v403_v24  ;;  %v887_v4 = vld [vmem:[%s1810_s14 + $0xa8] sm:$0xff]  ;;  %v886_v6 = vld [vmem:[%s1810_s14 + $0xa0] sm:$0xff]  ;;  %v885_v9 = vld [vmem:[%s1810_s14 + $0x98] sm:$0xff] }
  0x69   : > { %902 = vmatpush.msra.mxu2 %v877_v54  ;;  %967 = vmatpush.msra.mxu3 %v893_v55  ;;  %v392_v7 = vld [vmem:[#allocation3 + $0x70] sm:$0xff]  ;;  %v866_v14 = vld [vmem:[%s1810_s14] sm:$0xff]  ;;  %v393_v16 = vld [vmem:[#allocation3 + $0x78] sm:$0xff] }
  0x6a   : > { %444 = vmatpush.msra.mxu0 %v400_v25  ;;  %509 = vmatpush.msra.mxu1 %v401_v26  ;;  %v868_v10 = vld [vmem:[%s1810_s14 + $0x10] sm:$0xff]  ;;  %v867_v12 = vld [vmem:[%s1810_s14 + $0x8] sm:$0xff]  ;;  %v882_v15 = vld [vmem:[%s1810_s14 + $0x80] sm:$0xff] }
  0x6b   : > { %903 = vmatpush.msra.mxu2 %v876_v56  ;;  %968 = vmatpush.msra.mxu3 %v892_v57  ;;  %v884_v11 = vld [vmem:[%s1810_s14 + $0x90] sm:$0xff]  ;;  %v883_v13 = vld [vmem:[%s1810_s14 + $0x88] sm:$0xff]  ;;  %v426_v17 = vld [vmem:[%s1808_s6] sm:$0x3] }
  0x6c   : > { %445 = vmatpush.msra.mxu0 %v398_v27  ;;  %510 = vmatpush.msra.mxu1 %v399_v28  ;;  %v1882_v18 = vperm.slane %v426_v17, 0  ;;  %v1884_v19 = vperm.slane %v426_v17, 1 }
  0x6d   : > { %904 = vmatpush.msra.mxu2 %v875_v58  ;;  %969 = vmatpush.msra.mxu3 %v891_v59 }
  0x6e   : > { %446 = vmatpush.msra.mxu0 %v396_v29  ;;  %511 = vmatpush.msra.mxu1 %v397_v30 }
  0x6f   : > { %905 = vmatpush.msra.mxu2 %v874_v60  ;;  %970 = vmatpush.msra.mxu3 %v890_v61 }
  0x70   : > { %447 = vmatpush.msra.mxu0 %v394_v31  ;;  %512 = vmatpush.msra.mxu1 %v395_v32 }
  0x71   : > { %448 = vmatmul.f32.vlgmr.msra.gmra.mxu0 %v378_v33  ;;  %513 = vmatmul.f32.vlgmr.msra.gmra.mxu1 %v378_v33 }
  0x72   : > { %906 = vmatpush.msra.mxu2 %v873_v63  ;;  %971 = vmatpush.msra.mxu3 %v889_v0 }
  0x74   : > { %907 = vmatpush.msra.mxu2 %v872_v1  ;;  %972 = vmatpush.msra.mxu3 %v888_v2 }
  0x76   : > { %908 = vmatpush.msra.mxu2 %v871_v3  ;;  %973 = vmatpush.msra.mxu3 %v887_v4 }
  0x78   : > { %909 = vmatpush.msra.mxu2 %v870_v5  ;;  %974 = vmatpush.msra.mxu3 %v886_v6 }
  0x79   : > { %451 = vmatmul.f32.gmra.mxu0 %v379_v34  ;;  %516 = vmatmul.f32.gmra.mxu1 %v379_v34 }
  0x7a   : > { %910 = vmatpush.msra.mxu2 %v869_v8  ;;  %975 = vmatpush.msra.mxu3 %v885_v9 }
  0x7c   : > { %911 = vmatpush.msra.mxu2 %v868_v10  ;;  %976 = vmatpush.msra.mxu3 %v884_v11 }
  0x7e   : > { %912 = vmatpush.msra.mxu2 %v867_v12  ;;  %977 = vmatpush.msra.mxu3 %v883_v13 }
  0x80   : > { %913 = vmatpush.msra.mxu2 %v866_v14  ;;  %978 = vmatpush.msra.mxu3 %v882_v15 }
  0x81   : > { %454 = vmatmul.f32.gmra.mxu0 %v380_v35  ;;  %519 = vmatmul.f32.gmra.mxu1 %v380_v35 }
  0x89   : > { %457 = vmatmul.f32.gmra.mxu0 %v381_v36  ;;  %522 = vmatmul.f32.gmra.mxu1 %v381_v36 }
  0x91   : > { %460 = vmatmul.f32.gmra.mxu0 %v382_v37  ;;  %525 = vmatmul.f32.gmra.mxu1 %v382_v37 }
  0x99   : > { %463 = vmatmul.f32.gmra.mxu0 %v383_v38  ;;  %528 = vmatmul.f32.gmra.mxu1 %v383_v38 }
  0xa1   : > { %466 = vmatmul.f32.gmra.mxu0 %v384_v39  ;;  %531 = vmatmul.f32.gmra.mxu1 %v384_v39 }
  0xa9   : > { %469 = vmatmul.f32.gmra.mxu0 %v385_v40  ;;  %534 = vmatmul.f32.gmra.mxu1 %v385_v40 }
  0xb1   : > { %472 = vmatmul.f32.gmra.mxu0 %v386_v41  ;;  %537 = vmatmul.f32.gmra.mxu1 %v386_v41 }
  0xb9   : > { %475 = vmatmul.f32.gmra.mxu0 %v387_v42  ;;  %540 = vmatmul.f32.gmra.mxu1 %v387_v42 }
  0xc1   : > { %478 = vmatmul.f32.gmra.mxu0 %v388_v43  ;;  %543 = vmatmul.f32.gmra.mxu1 %v388_v43 }
  0xc9   : > { %481 = vmatmul.f32.gmra.mxu0 %v389_v46  ;;  %546 = vmatmul.f32.gmra.mxu1 %v389_v46 }
  0xd1   : > { %484 = vmatmul.f32.gmra.mxu0 %v390_v53  ;;  %549 = vmatmul.f32.gmra.mxu1 %v390_v53 }
  0xd9   : > { %487 = vmatmul.f32.gmra.mxu0 %v391_v62  ;;  %552 = vmatmul.f32.gmra.mxu1 %v391_v62 }
  0xe1   : > { %490 = vmatmul.f32.gmra.mxu0 %v392_v7  ;;  %555 = vmatmul.f32.gmra.mxu1 %v392_v7 }
  0xe9   : > { %493 = vmatmul.f32.gmra.mxu0 %v393_v16  ;;  %558 = vmatmul.f32.gmra.mxu1 %v393_v16 }
  0xee   : > { %v449_v20 = vpop.f32.mrf.mxu0  ;;  %v514_v21 = vpop.f32.mrf.mxu1 }
  0xef   : > { %v450_v22 = vadd.f32 %v449_v20, %v1882_v18  ;;  %v515_v23 = vadd.f32 %v514_v21, %v1884_v19 }
  0xf1   : > { %v594_v24 = vmul.f32 0.044715, %v450_v22  ;;  %v595_v25 = vmul.f32 0.044715, %v515_v23  ;;  %v562_v54 = vmul.f32 0.5, %v450_v22  ;;  %v563_v58 = vmul.f32 0.5, %v515_v23 }
  0xf3   : > { %v626_v26 = vmul.f32 %v594_v24, %v450_v22  ;;  %v627_v27 = vmul.f32 %v595_v25, %v515_v23 }
  0xf5   : > { %v658_v28 = vmul.f32 %v626_v26, %v450_v22  ;;  %v659_v29 = vmul.f32 %v627_v27, %v515_v23 }
  0xf6   : > { %v452_v30 = vpop.f32.mrf.mxu0  ;;  %v517_v31 = vpop.f32.mrf.mxu1 }
  0xf7   : > { %v453_v32 = vadd.f32 %v452_v30, %v1882_v18  ;;  %v518_v33 = vadd.f32 %v517_v31, %v1884_v19  ;;  %v690_v34 = vadd.f32 %v658_v28, %v450_v22  ;;  %v691_v35 = vadd.f32 %v659_v29, %v515_v23 }
  0xf9   : > { %v722_v36 = vmul.f32 0.7978846, %v690_v34  ;;  %v723_v37 = vmul.f32 0.7978846, %v691_v35  ;;  %v596_v38 = vmul.f32 0.044715, %v453_v32 }
  0xfa   : > { %v597_v39 = vmul.f32 0.044715, %v518_v33  ;;  %v564_v14 = vmul.f32 0.5, %v453_v32  ;;  %v565_v16 = vmul.f32 0.5, %v518_v33 }
  0xfb   : > { %1364 = vtanh.f32 %v722_v36  ;;  %v628_v40 = vmul.f32 %v596_v38, %v453_v32 }
  0xfc   : > { %1366 = vtanh.f32 %v723_v37  ;;  %v629_v41 = vmul.f32 %v597_v39, %v518_v33 }
  0xfd   : > { %v660_v44 = vmul.f32 %v628_v40, %v453_v32 }
  0xfe   : > { %v455_v42 = vpop.f32.mrf.mxu0  ;;  %v520_v43 = vpop.f32.mrf.mxu1  ;;  %v661_v45 = vmul.f32 %v629_v41, %v518_v33 }
  0xff   : > { %v456_v46 = vadd.f32 %v455_v42, %v1882_v18  ;;  %v521_v47 = vadd.f32 %v520_v43, %v1884_v19  ;;  %v692_v48 = vadd.f32 %v660_v44, %v453_v32 }
 0x100   : > { %v693_v49 = vadd.f32 %v661_v45, %v518_v33 }
 0x101   : > { %v1365_v50 = vpop.eup %1364  ;;  %v598_v51 = vmul.f32 0.044715, %v456_v46  ;;  %v599_v52 = vmul.f32 0.044715, %v521_v47  ;;  %v724_v56 = vmul.f32 0.7978846, %v692_v48 }
 0x102   : > { %v1367_v53 = vpop.eup %1366  ;;  %v786_v55 = vadd.f32 1.0, %v1365_v50  ;;  %v725_v57 = vmul.f32 0.7978846, %v693_v49  ;;  %v566_v36 = vmul.f32 0.5, %v456_v46  ;;  %v567_v40 = vmul.f32 0.5, %v521_v47 }
 0x103   : > { %v787_v59 = vadd.f32 1.0, %v1367_v53  ;;  %v630_v60 = vmul.f32 %v598_v51, %v456_v46  ;;  %v631_v61 = vmul.f32 %v599_v52, %v521_v47  ;;  %1368 = vtanh.f32 %v724_v56 }
 0x104   : > { %v818_v62 = vmul.f32 %v786_v55, %v562_v54  ;;  %1370 = vtanh.f32 %v725_v57 }
 0x105   : > { %v819_v63 = vmul.f32 %v787_v59, %v563_v58  ;;  %v662_v0 = vmul.f32 %v630_v60, %v456_v46  ;;  %v663_v1 = vmul.f32 %v631_v61, %v521_v47 }
 0x106   : > { %v458_v2 = vpop.f32.mrf.mxu0  ;;  %v523_v3 = vpop.f32.mrf.mxu1  ;;  %914 = vmatmul.f32.vlgmr.msra.gmra.mxu2 %v818_v62 }
 0x107   : > { %v459_v4 = vadd.f32 %v458_v2, %v1882_v18  ;;  %v1894_v5 = vadd.f32 %v523_v3, %v1884_v19  ;;  %979 = vmatmul.f32.vlgmr.msra.gmra.mxu3 %v819_v63  ;;  %v694_v6 = vadd.f32 %v662_v0, %v456_v46  ;;  %v695_v7 = vadd.f32 %v663_v1, %v521_v47 }
 0x109   : > { %v726_v8 = vmul.f32 0.7978846, %v694_v6  ;;  %v727_v9 = vmul.f32 0.7978846, %v695_v7  ;;  %v1369_v10 = vpop.eup %1368  ;;  %v600_v11 = vmul.f32 0.044715, %v459_v4 }
 0x10a   : > { %v601_v12 = vmul.f32 0.044715, %v1894_v5  ;;  %v1371_v13 = vpop.eup %1370  ;;  %v788_v15 = vadd.f32 1.0, %v1369_v10  ;;  %v568_v60 = vmul.f32 0.5, %v459_v4  ;;  %v569_v62 = vmul.f32 0.5, %v1894_v5 }
 0x10b   : > { %1372 = vtanh.f32 %v726_v8  ;;  %v789_v17 = vadd.f32 1.0, %v1371_v13  ;;  %v632_v20 = vmul.f32 %v600_v11, %v459_v4 }
 0x10c   : > { %1374 = vtanh.f32 %v727_v9  ;;  %v633_v21 = vmul.f32 %v601_v12, %v1894_v5  ;;  %v820_v22 = vmul.f32 %v788_v15, %v564_v14 }
 0x10d   : > { %v821_v25 = vmul.f32 %v789_v17, %v565_v16  ;;  %v664_v26 = vmul.f32 %v632_v20, %v459_v4 }
 0x10e   : > { %v461_v23 = vpop.f32.mrf.mxu0  ;;  %v526_v24 = vpop.f32.mrf.mxu1  ;;  %v665_v27 = vmul.f32 %v633_v21, %v1894_v5  ;;  %917 = vmatmul.f32.gmra.mxu2 %v820_v22 }
 0x10f   : > { %v462_v28 = vadd.f32 %v461_v23, %v1882_v18  ;;  %v1901_v29 = vadd.f32 %v526_v24, %v1884_v19  ;;  %982 = vmatmul.f32.gmra.mxu3 %v821_v25  ;;  %v696_v30 = vadd.f32 %v664_v26, %v459_v4 }
 0x110   : > { %v697_v31 = vadd.f32 %v665_v27, %v1894_v5 }
 0x111   : > { %v1373_v32 = vpop.eup %1372  ;;  %v602_v33 = vmul.f32 0.044715, %v462_v28  ;;  %v603_v34 = vmul.f32 0.044715, %v1901_v29  ;;  %v728_v38 = vmul.f32 0.7978846, %v696_v30 }
 0x112   : > { %v1375_v35 = vpop.eup %1374  ;;  %v790_v37 = vadd.f32 1.0, %v1373_v32  ;;  %v729_v39 = vmul.f32 0.7978846, %v697_v31  ;;  %v570_v16 = vmul.f32 0.5, %v462_v28  ;;  %v571_v22 = vmul.f32 0.5, %v1901_v29 }
 0x113   : > { %v791_v41 = vadd.f32 1.0, %v1375_v35  ;;  %v634_v42 = vmul.f32 %v602_v33, %v462_v28  ;;  %v635_v43 = vmul.f32 %v603_v34, %v1901_v29  ;;  %1376 = vtanh.f32 %v728_v38 }
 0x114   : > { %v822_v44 = vmul.f32 %v790_v37, %v566_v36  ;;  %1378 = vtanh.f32 %v729_v39 }
 0x115   : > { %v823_v45 = vmul.f32 %v791_v41, %v567_v40  ;;  %v666_v48 = vmul.f32 %v634_v42, %v462_v28  ;;  %v667_v49 = vmul.f32 %v635_v43, %v1901_v29 }
 0x116   : > { %v464_v50 = vpop.f32.mrf.mxu0  ;;  %v529_v51 = vpop.f32.mrf.mxu1  ;;  %920 = vmatmul.f32.gmra.mxu2 %v822_v44 }
 0x117   : > { %v1908_v52 = vadd.f32 %v464_v50, %v1882_v18  ;;  %v1911_v46 = vadd.f32 %v529_v51, %v1884_v19  ;;  %v698_v47 = vadd.f32 %v666_v48, %v462_v28  ;;  %v699_v53 = vadd.f32 %v667_v49, %v1901_v29  ;;  %985 = vmatmul.f32.gmra.mxu3 %v823_v45 }
 0x119   : > { %v730_v54 = vmul.f32 0.7978846, %v698_v47  ;;  %v731_v55 = vmul.f32 0.7978846, %v699_v53  ;;  %v1377_v56 = vpop.eup %1376  ;;  %v604_v57 = vmul.f32 0.044715, %v1908_v52 }
 0x11a   : > { %v605_v58 = vmul.f32 0.044715, %v1911_v46  ;;  %v1379_v59 = vpop.eup %1378  ;;  %v792_v61 = vadd.f32 1.0, %v1377_v56  ;;  %v572_v42 = vmul.f32 0.5, %v1908_v52  ;;  %v573_v44 = vmul.f32 0.5, %v1911_v46 }
 0x11b   : > { %1380 = vtanh.f32 %v730_v54  ;;  %v793_v63 = vadd.f32 1.0, %v1379_v59  ;;  %v636_v0 = vmul.f32 %v604_v57, %v1908_v52 }
 0x11c   : > { %1382 = vtanh.f32 %v731_v55  ;;  %v637_v1 = vmul.f32 %v605_v58, %v1911_v46  ;;  %v824_v2 = vmul.f32 %v792_v61, %v568_v60 }
 0x11d   : > { %v825_v7 = vmul.f32 %v793_v63, %v569_v62  ;;  %v668_v8 = vmul.f32 %v636_v0, %v1908_v52 }
 0x11e   : > { %v467_v3 = vpop.f32.mrf.mxu0  ;;  %v532_v6 = vpop.f32.mrf.mxu1  ;;  %v669_v9 = vmul.f32 %v637_v1, %v1911_v46  ;;  %923 = vmatmul.f32.gmra.mxu2 %v824_v2 }
 0x11f   : > { %v468_v4 = vadd.f32 %v467_v3, %v1882_v18  ;;  %v1923_v10 = vadd.f32 %v532_v6, %v1884_v19  ;;  %988 = vmatmul.f32.gmra.mxu3 %v825_v7  ;;  %v700_v5 = vadd.f32 %v668_v8, %v1908_v52 }
 0x120   : > { %v701_v11 = vadd.f32 %v669_v9, %v1911_v46 }
 0x121   : > { %v1381_v12 = vpop.eup %1380  ;;  %v606_v13 = vmul.f32 0.044715, %v468_v4  ;;  %v607_v14 = vmul.f32 0.044715, %v1923_v10  ;;  %v732_v20 = vmul.f32 0.7978846, %v700_v5 }
 0x122   : > { %v1383_v15 = vpop.eup %1382  ;;  %v794_v17 = vadd.f32 1.0, %v1381_v12  ;;  %v733_v21 = vmul.f32 0.7978846, %v701_v11  ;;  %v574_v62 = vmul.f32 0.5, %v468_v4  ;;  %v575_v2 = vmul.f32 0.5, %v1923_v10 }
 0x123   : > { %v795_v23 = vadd.f32 1.0, %v1383_v15  ;;  %v638_v24 = vmul.f32 %v606_v13, %v468_v4  ;;  %v639_v25 = vmul.f32 %v607_v14, %v1923_v10  ;;  %1384 = vtanh.f32 %v732_v20 }
 0x124   : > { %v826_v26 = vmul.f32 %v794_v17, %v570_v16  ;;  %1386 = vtanh.f32 %v733_v21 }
 0x125   : > { %v827_v27 = vmul.f32 %v795_v23, %v571_v22  ;;  %v670_v30 = vmul.f32 %v638_v24, %v468_v4  ;;  %v671_v31 = vmul.f32 %v639_v25, %v1923_v10 }
 0x126   : > { %v470_v32 = vpop.f32.mrf.mxu0  ;;  %v535_v33 = vpop.f32.mrf.mxu1  ;;  %926 = vmatmul.f32.gmra.mxu2 %v826_v26 }
 0x127   : > { %v1932_v28 = vadd.f32 %v470_v32, %v1882_v18  ;;  %v1935_v34 = vadd.f32 %v535_v33, %v1884_v19  ;;  %v702_v29 = vadd.f32 %v670_v30, %v468_v4  ;;  %v703_v35 = vadd.f32 %v671_v31, %v1923_v10  ;;  %991 = vmatmul.f32.gmra.mxu3 %v827_v27 }
 0x129   : > { %v734_v36 = vmul.f32 0.7978846, %v702_v29  ;;  %v735_v37 = vmul.f32 0.7978846, %v703_v35  ;;  %v1385_v38 = vpop.eup %1384  ;;  %v608_v39 = vmul.f32 0.044715, %v1932_v28 }
 0x12a   : > { %v609_v40 = vmul.f32 0.044715, %v1935_v34  ;;  %v1387_v41 = vpop.eup %1386  ;;  %v796_v43 = vadd.f32 1.0, %v1385_v38  ;;  %v576_v24 = vmul.f32 0.5, %v1932_v28  ;;  %v577_v26 = vmul.f32 0.5, %v1935_v34 }
 0x12b   : > { %1388 = vtanh.f32 %v734_v36  ;;  %v797_v45 = vadd.f32 1.0, %v1387_v41  ;;  %v640_v48 = vmul.f32 %v608_v39, %v1932_v28 }
 0x12c   : > { %1390 = vtanh.f32 %v735_v37  ;;  %v641_v49 = vmul.f32 %v609_v40, %v1935_v34  ;;  %v828_v50 = vmul.f32 %v796_v43, %v572_v42 }
 0x12d   : > { %v829_v53 = vmul.f32 %v797_v45, %v573_v44  ;;  %v672_v54 = vmul.f32 %v640_v48, %v1932_v28 }
 0x12e   : > { %v473_v51 = vpop.f32.mrf.mxu0  ;;  %v538_v47 = vpop.f32.mrf.mxu1  ;;  %v673_v55 = vmul.f32 %v641_v49, %v1935_v34  ;;  %929 = vmatmul.f32.gmra.mxu2 %v828_v50 }
 0x12f   : > { %v474_v52 = vadd.f32 %v473_v51, %v1882_v18  ;;  %v1948_v56 = vadd.f32 %v538_v47, %v1884_v19  ;;  %994 = vmatmul.f32.gmra.mxu3 %v829_v53  ;;  %v704_v46 = vadd.f32 %v672_v54, %v1932_v28 }
 0x130   : > { %v705_v57 = vadd.f32 %v673_v55, %v1935_v34 }
 0x131   : > { %v1389_v58 = vpop.eup %1388  ;;  %v610_v59 = vmul.f32 0.044715, %v474_v52  ;;  %v611_v60 = vmul.f32 0.044715, %v1948_v56  ;;  %v736_v0 = vmul.f32 0.7978846, %v704_v46 }
 0x132   : > { %v1391_v61 = vpop.eup %1390  ;;  %v798_v63 = vadd.f32 1.0, %v1389_v58  ;;  %v737_v1 = vmul.f32 0.7978846, %v705_v57  ;;  %v578_v44 = vmul.f32 0.5, %v474_v52  ;;  %v579_v50 = vmul.f32 0.5, %v1948_v56 }
 0x133   : > { %v799_v3 = vadd.f32 1.0, %v1391_v61  ;;  %v642_v6 = vmul.f32 %v610_v59, %v474_v52  ;;  %v643_v7 = vmul.f32 %v611_v60, %v1948_v56  ;;  %1392 = vtanh.f32 %v736_v0 }
 0x134   : > { %v830_v8 = vmul.f32 %v798_v63, %v574_v62  ;;  %1394 = vtanh.f32 %v737_v1 }
 0x135   : > { %v831_v9 = vmul.f32 %v799_v3, %v575_v2  ;;  %v674_v5 = vmul.f32 %v642_v6, %v474_v52  ;;  %v675_v11 = vmul.f32 %v643_v7, %v1948_v56 }
 0x136   : > { %v476_v12 = vpop.f32.mrf.mxu0  ;;  %v541_v13 = vpop.f32.mrf.mxu1  ;;  %932 = vmatmul.f32.gmra.mxu2 %v830_v8 }
 0x137   : > { %v1957_v4 = vadd.f32 %v476_v12, %v1882_v18  ;;  %v1960_v14 = vadd.f32 %v541_v13, %v1884_v19  ;;  %v706_v10 = vadd.f32 %v674_v5, %v474_v52  ;;  %v707_v15 = vadd.f32 %v675_v11, %v1948_v56  ;;  %997 = vmatmul.f32.gmra.mxu3 %v831_v9 }
 0x139   : > { %v738_v16 = vmul.f32 0.7978846, %v706_v10  ;;  %v739_v17 = vmul.f32 0.7978846, %v707_v15  ;;  %v1393_v20 = vpop.eup %1392  ;;  %v612_v21 = vmul.f32 0.044715, %v1957_v4 }
 0x13a   : > { %v613_v22 = vmul.f32 0.044715, %v1960_v14  ;;  %v1395_v23 = vpop.eup %1394  ;;  %v800_v25 = vadd.f32 1.0, %v1393_v20  ;;  %v580_v6 = vmul.f32 0.5, %v1957_v4  ;;  %v581_v8 = vmul.f32 0.5, %v1960_v14 }
 0x13b   : > { %1396 = vtanh.f32 %v738_v16  ;;  %v801_v27 = vadd.f32 1.0, %v1395_v23  ;;  %v644_v30 = vmul.f32 %v612_v21, %v1957_v4 }
 0x13c   : > { %1398 = vtanh.f32 %v739_v17  ;;  %v645_v31 = vmul.f32 %v613_v22, %v1960_v14  ;;  %v832_v32 = vmul.f32 %v800_v25, %v576_v24 }
 0x13d   : > { %v833_v35 = vmul.f32 %v801_v27, %v577_v26  ;;  %v676_v36 = vmul.f32 %v644_v30, %v1957_v4 }
 0x13e   : > { %v479_v33 = vpop.f32.mrf.mxu0  ;;  %v544_v29 = vpop.f32.mrf.mxu1  ;;  %v677_v37 = vmul.f32 %v645_v31, %v1960_v14  ;;  %935 = vmatmul.f32.gmra.mxu2 %v832_v32 }
 0x13f   : > { %v480_v28 = vadd.f32 %v479_v33, %v1882_v18  ;;  %v1973_v38 = vadd.f32 %v544_v29, %v1884_v19  ;;  %1000 = vmatmul.f32.gmra.mxu3 %v833_v35  ;;  %v708_v34 = vadd.f32 %v676_v36, %v1957_v4 }
 0x140   : > { %v709_v39 = vadd.f32 %v677_v37, %v1960_v14 }
 0x141   : > { %v1397_v40 = vpop.eup %1396  ;;  %v614_v41 = vmul.f32 0.044715, %v480_v28  ;;  %v615_v42 = vmul.f32 0.044715, %v1973_v38  ;;  %v740_v48 = vmul.f32 0.7978846, %v708_v34 }
 0x142   : > { %v1399_v43 = vpop.eup %1398  ;;  %v802_v45 = vadd.f32 1.0, %v1397_v40  ;;  %v741_v49 = vmul.f32 0.7978846, %v709_v39  ;;  %v582_v26 = vmul.f32 0.5, %v480_v28  ;;  %v583_v32 = vmul.f32 0.5, %v1973_v38 }
 0x143   : > { %v803_v51 = vadd.f32 1.0, %v1399_v43  ;;  %v646_v47 = vmul.f32 %v614_v41, %v480_v28  ;;  %v647_v53 = vmul.f32 %v615_v42, %v1973_v38  ;;  %1400 = vtanh.f32 %v740_v48 }
 0x144   : > { %v834_v54 = vmul.f32 %v802_v45, %v578_v44  ;;  %1402 = vtanh.f32 %v741_v49 }
 0x145   : > { %v835_v55 = vmul.f32 %v803_v51, %v579_v50  ;;  %v678_v46 = vmul.f32 %v646_v47, %v480_v28  ;;  %v679_v57 = vmul.f32 %v647_v53, %v1973_v38 }
 0x146   : > { %v482_v58 = vpop.f32.mrf.mxu0  ;;  %v547_v59 = vpop.f32.mrf.mxu1  ;;  %938 = vmatmul.f32.gmra.mxu2 %v834_v54 }
 0x147   : > { %v1982_v52 = vadd.f32 %v482_v58, %v1882_v18  ;;  %v1985_v60 = vadd.f32 %v547_v59, %v1884_v19  ;;  %v710_v56 = vadd.f32 %v678_v46, %v480_v28  ;;  %v711_v61 = vadd.f32 %v679_v57, %v1973_v38  ;;  %1003 = vmatmul.f32.gmra.mxu3 %v835_v55 }
 0x149   : > { %v742_v62 = vmul.f32 0.7978846, %v710_v56  ;;  %v743_v63 = vmul.f32 0.7978846, %v711_v61  ;;  %v1401_v0 = vpop.eup %1400  ;;  %v616_v1 = vmul.f32 0.044715, %v1982_v52 }
 0x14a   : > { %v617_v2 = vmul.f32 0.044715, %v1985_v60  ;;  %v1403_v3 = vpop.eup %1402  ;;  %v804_v7 = vadd.f32 1.0, %v1401_v0  ;;  %v584_v47 = vmul.f32 0.5, %v1982_v52  ;;  %v585_v54 = vmul.f32 0.5, %v1985_v60 }
 0x14b   : > { %1404 = vtanh.f32 %v742_v62  ;;  %v805_v9 = vadd.f32 1.0, %v1403_v3  ;;  %v648_v5 = vmul.f32 %v616_v1, %v1982_v52 }
 0x14c   : > { %1406 = vtanh.f32 %v743_v63  ;;  %v649_v11 = vmul.f32 %v617_v2, %v1985_v60  ;;  %v836_v12 = vmul.f32 %v804_v7, %v580_v6 }
 0x14d   : > { %v837_v15 = vmul.f32 %v805_v9, %v581_v8  ;;  %v680_v16 = vmul.f32 %v648_v5, %v1982_v52 }
 0x14e   : > { %v485_v13 = vpop.f32.mrf.mxu0  ;;  %v550_v10 = vpop.f32.mrf.mxu1  ;;  %v681_v17 = vmul.f32 %v649_v11, %v1985_v60  ;;  %941 = vmatmul.f32.gmra.mxu2 %v836_v12 }
 0x14f   : > { %v486_v4 = vadd.f32 %v485_v13, %v1882_v18  ;;  %v1998_v20 = vadd.f32 %v550_v10, %v1884_v19  ;;  %1006 = vmatmul.f32.gmra.mxu3 %v837_v15  ;;  %v712_v14 = vadd.f32 %v680_v16, %v1982_v52 }
 0x150   : > { %v713_v21 = vadd.f32 %v681_v17, %v1985_v60 }
 0x151   : > { %v1405_v22 = vpop.eup %1404  ;;  %v618_v23 = vmul.f32 0.044715, %v486_v4  ;;  %v619_v24 = vmul.f32 0.044715, %v1998_v20  ;;  %v744_v30 = vmul.f32 0.7978846, %v712_v14 }
 0x152   : > { %v1407_v25 = vpop.eup %1406  ;;  %v806_v27 = vadd.f32 1.0, %v1405_v22  ;;  %v745_v31 = vmul.f32 0.7978846, %v713_v21  ;;  %v586_v8 = vmul.f32 0.5, %v486_v4  ;;  %v587_v12 = vmul.f32 0.5, %v1998_v20 }
 0x153   : > { %v807_v33 = vadd.f32 1.0, %v1407_v25  ;;  %v650_v29 = vmul.f32 %v618_v23, %v486_v4  ;;  %v651_v35 = vmul.f32 %v619_v24, %v1998_v20  ;;  %1408 = vtanh.f32 %v744_v30 }
 0x154   : > { %v838_v36 = vmul.f32 %v806_v27, %v582_v26  ;;  %1410 = vtanh.f32 %v745_v31 }
 0x155   : > { %v839_v37 = vmul.f32 %v807_v33, %v583_v32  ;;  %v682_v34 = vmul.f32 %v650_v29, %v486_v4  ;;  %v683_v39 = vmul.f32 %v651_v35, %v1998_v20 }
 0x156   : > { %v488_v40 = vpop.f32.mrf.mxu0  ;;  %v553_v41 = vpop.f32.mrf.mxu1  ;;  %944 = vmatmul.f32.gmra.mxu2 %v838_v36 }
 0x157   : > { %v2007_v28 = vadd.f32 %v488_v40, %v1882_v18  ;;  %v2010_v42 = vadd.f32 %v553_v41, %v1884_v19  ;;  %v714_v38 = vadd.f32 %v682_v34, %v486_v4  ;;  %v715_v43 = vadd.f32 %v683_v39, %v1998_v20  ;;  %1009 = vmatmul.f32.gmra.mxu3 %v839_v37 }
 0x159   : > { %v746_v44 = vmul.f32 0.7978846, %v714_v38  ;;  %v747_v45 = vmul.f32 0.7978846, %v715_v43  ;;  %v1409_v48 = vpop.eup %1408  ;;  %v620_v49 = vmul.f32 0.044715, %v2007_v28 }
 0x15a   : > { %v621_v50 = vmul.f32 0.044715, %v2010_v42  ;;  %v1411_v51 = vpop.eup %1410  ;;  %v808_v53 = vadd.f32 1.0, %v1409_v48  ;;  %v588_v29 = vmul.f32 0.5, %v2007_v28  ;;  %v589_v36 = vmul.f32 0.5, %v2010_v42 }
 0x15b   : > { %1412 = vtanh.f32 %v746_v44  ;;  %v809_v55 = vadd.f32 1.0, %v1411_v51  ;;  %v652_v46 = vmul.f32 %v620_v49, %v2007_v28 }
 0x15c   : > { %1414 = vtanh.f32 %v747_v45  ;;  %v653_v57 = vmul.f32 %v621_v50, %v2010_v42  ;;  %v840_v58 = vmul.f32 %v808_v53, %v584_v47 }
 0x15d   : > { %v841_v61 = vmul.f32 %v809_v55, %v585_v54  ;;  %v684_v62 = vmul.f32 %v652_v46, %v2007_v28 }
 0x15e   : > { %v491_v59 = vpop.f32.mrf.mxu0  ;;  %v556_v56 = vpop.f32.mrf.mxu1  ;;  %v685_v63 = vmul.f32 %v653_v57, %v2010_v42  ;;  %947 = vmatmul.f32.gmra.mxu2 %v840_v58 }
 0x15f   : > { %v492_v52 = vadd.f32 %v491_v59, %v1882_v18  ;;  %v557_v0 = vadd.f32 %v556_v56, %v1884_v19  ;;  %1012 = vmatmul.f32.gmra.mxu3 %v841_v61  ;;  %v716_v60 = vadd.f32 %v684_v62, %v2007_v28 }
 0x160   : > { %v717_v1 = vadd.f32 %v685_v63, %v2010_v42  ;;  %v850_v63 = vld [vmem:[#allocation2 + $0x30] sm:$0xff] }
 0x161   : > { %v1413_v2 = vpop.eup %1412  ;;  %v622_v3 = vmul.f32 0.044715, %v492_v52  ;;  %v623_v6 = vmul.f32 0.044715, %v557_v0  ;;  %v748_v5 = vmul.f32 0.7978846, %v716_v60 }
 0x162   : > { %v1415_v7 = vpop.eup %1414  ;;  %v810_v9 = vadd.f32 1.0, %v1413_v2  ;;  %v749_v11 = vmul.f32 0.7978846, %v717_v1  ;;  %v590_v48 = vmul.f32 0.5, %v492_v52  ;;  %v591_v42 = vmul.f32 0.5, %v557_v0  ;;  %v851_v2 = vld [vmem:[#allocation2] sm:$0xff] }
 0x163   : > { %v811_v13 = vadd.f32 1.0, %v1415_v7  ;;  %v654_v10 = vmul.f32 %v622_v3, %v492_v52  ;;  %v655_v15 = vmul.f32 %v623_v6, %v557_v0  ;;  %1416 = vtanh.f32 %v748_v5 }
 0x164   : > { %v842_v16 = vmul.f32 %v810_v9, %v586_v8  ;;  %1418 = vtanh.f32 %v749_v11  ;;  %v852_v9 = vld [vmem:[#allocation2 + $0x58] sm:$0xff] }
 0x165   : > { %v843_v17 = vmul.f32 %v811_v13, %v587_v12  ;;  %v686_v14 = vmul.f32 %v654_v10, %v492_v52  ;;  %v687_v21 = vmul.f32 %v655_v15, %v557_v0  ;;  %v853_v10 = vld [vmem:[#allocation2 + $0x18] sm:$0xff] }
 0x166   : > { %v494_v22 = vpop.f32.mrf.mxu0  ;;  %v559_v23 = vpop.f32.mrf.mxu1  ;;  %950 = vmatmul.f32.gmra.mxu2 %v842_v16 }
 0x167   : > { %v495_v24 = vadd.f32 %v494_v22, %v1882_v18  ;;  %v560_v4 = vadd.f32 %v559_v23, %v1884_v19  ;;  %v718_v25 = vadd.f32 %v686_v14, %v492_v52  ;;  %v719_v26 = vadd.f32 %v687_v21, %v557_v0  ;;  %1015 = vmatmul.f32.gmra.mxu3 %v843_v17  ;;  %v854_v21 = vld [vmem:[#allocation2 + $0x50] sm:$0xff] }
 0x169   : > { %v750_v20 = vmul.f32 0.7978846, %v718_v25  ;;  %v751_v27 = vmul.f32 0.7978846, %v719_v26  ;;  %v1417_v30 = vpop.eup %1416  ;;  %v624_v31 = vmul.f32 0.044715, %v495_v24 }
 0x16a   : > { %v625_v32 = vmul.f32 0.044715, %v560_v4  ;;  %v1419_v33 = vpop.eup %1418  ;;  %v812_v35 = vadd.f32 1.0, %v1417_v30  ;;  %v592_v46 = vmul.f32 0.5, %v495_v24  ;;  %v593_v58 = vmul.f32 0.5, %v560_v4  ;;  %v855_v25 = vld [vmem:[#allocation2 + $0x68] sm:$0xff] }
 0x16b   : > { %1420 = vtanh.f32 %v750_v20  ;;  %v813_v37 = vadd.f32 1.0, %v1419_v33  ;;  %v656_v18 = vmul.f32 %v624_v31, %v495_v24  ;;  %v856_v31 = vld [vmem:[#allocation2 + $0x8] sm:$0xff] }
 0x16c   : > { %1422 = vtanh.f32 %v751_v27  ;;  %v657_v19 = vmul.f32 %v625_v32, %v560_v4  ;;  %v844_v34 = vmul.f32 %v812_v35, %v588_v29 }
 0x16d   : > { %v845_v39 = vmul.f32 %v813_v37, %v589_v36  ;;  %v688_v40 = vmul.f32 %v656_v18, %v495_v24  ;;  %v857_v36 = vld [vmem:[#allocation2 + $0x48] sm:$0xff] }
 0x16e   : > { %v689_v41 = vmul.f32 %v657_v19, %v560_v4  ;;  %953 = vmatmul.f32.gmra.mxu2 %v844_v34 }
 0x16f   : > { %1018 = vmatmul.f32.gmra.mxu3 %v845_v39  ;;  %v720_v38 = vadd.f32 %v688_v40, %v495_v24  ;;  %v858_v39 = vld [vmem:[#allocation2 + $0x40] sm:$0xff] }
 0x170   : > { %v721_v43 = vadd.f32 %v689_v41, %v560_v4 }
 0x171   : > { %v1421_v44 = vpop.eup %1420  ;;  %v752_v49 = vmul.f32 0.7978846, %v720_v38 }
 0x172   : > { %v1423_v45 = vpop.eup %1422  ;;  %v814_v28 = vadd.f32 1.0, %v1421_v44  ;;  %v753_v50 = vmul.f32 0.7978846, %v721_v43  ;;  %v859_v44 = vld [vmem:[#allocation2 + $0x20] sm:$0xff] }
 0x173   : > { %v815_v51 = vadd.f32 1.0, %v1423_v45  ;;  %1424 = vtanh.f32 %v752_v49 }
 0x174   : > { %v846_v47 = vmul.f32 %v814_v28, %v590_v48  ;;  %1426 = vtanh.f32 %v753_v50  ;;  %v860_v50 = vld [vmem:[#allocation2 + $0x10] sm:$0xff] }
 0x175   : > { %v847_v53 = vmul.f32 %v815_v51, %v591_v42 }
 0x176   : > { %956 = vmatmul.f32.gmra.mxu2 %v846_v47 }
 0x177   : > { %1021 = vmatmul.f32.gmra.mxu3 %v847_v53 }
 0x179   : > { %v1425_v54 = vpop.eup %1424 }
 0x17a   : > { %v1427_v55 = vpop.eup %1426  ;;  %v816_v57 = vadd.f32 1.0, %v1425_v54  ;;  %v861_v54 = vld [vmem:[#allocation2 + $0x38] sm:$0xff] }
 0x17b   : > { %v817_v59 = vadd.f32 1.0, %v1427_v55 }
 0x17c   : > { %v848_v56 = vmul.f32 %v816_v57, %v592_v46 }
 0x17d   : > { %v849_v61 = vmul.f32 %v817_v59, %v593_v58  ;;  %v862_v59 = vld [vmem:[#allocation2 + $0x60] sm:$0xff] }
 0x17e   : > { %959 = vmatmul.f32.gmra.mxu2 %v848_v56 }
 0x17f   : > { %1024 = vmatmul.f32.gmra.mxu3 %v849_v61 }
 0x189   : > { %v915_v62 = vpop.f32.mrf.mxu2 }
 0x18a   : > { %v980_v52 = vpop.f32.mrf.mxu3 }
 0x18b   : > { %v981_v0 = vadd.f32 %v980_v52, %v915_v62  ;;  %v863_v52 = vld [vmem:[#allocation2 + $0x70] sm:$0xff] }
 0x18d   : > { %v1028_v60 = vadd.f32 %v981_v0, %v850_v63 }
 0x18f   : > { %1044 = vst [vmem:[#allocation2 + $0x30] sm:$0xff] %v1028_v60 }
 0x191   : > { %v918_v1 = vpop.f32.mrf.mxu2 }
 0x192   : > { %v983_v3 = vpop.f32.mrf.mxu3 }
 0x193   : > { %v984_v6 = vadd.f32 %v983_v3, %v918_v1  ;;  %v864_v3 = vld [vmem:[#allocation2 + $0x78] sm:$0xff] }
 0x195   : > { %v1029_v7 = vadd.f32 %v984_v6, %v851_v2 }
 0x197   : > { %1045 = vst [vmem:[#allocation2] sm:$0xff] %v1029_v7 }
 0x199   : > { %v921_v8 = vpop.f32.mrf.mxu2 }
 0x19a   : > { %v986_v5 = vpop.f32.mrf.mxu3 }
 0x19b   : > { %v987_v11 = vadd.f32 %v986_v5, %v921_v8  ;;  %v865_v5 = vld [vmem:[#allocation2 + $0x28] sm:$0xff] }
 0x19d   : > { %v1030_v12 = vadd.f32 %v987_v11, %v852_v9 }
 0x19f   : > { %1046 = vst [vmem:[#allocation2 + $0x58] sm:$0xff] %v1030_v12 }
 0x1a1   : > { %v924_v13 = vpop.f32.mrf.mxu2 }
 0x1a2   : > { %v989_v15 = vpop.f32.mrf.mxu3 }
 0x1a3   : > { %v990_v16 = vadd.f32 %v989_v15, %v924_v13 }
 0x1a5   : > { %v1031_v17 = vadd.f32 %v990_v16, %v853_v10 }
 0x1a7   : > { %1047 = vst [vmem:[#allocation2 + $0x18] sm:$0xff] %v1031_v17 }
 0x1a9   : > { %v927_v14 = vpop.f32.mrf.mxu2 }
 0x1aa   : > { %v992_v22 = vpop.f32.mrf.mxu3 }
 0x1ab   : > { %v993_v23 = vadd.f32 %v992_v22, %v927_v14 }
 0x1ad   : > { %v1032_v24 = vadd.f32 %v993_v23, %v854_v21 }
 0x1af   : > { %1048 = vst [vmem:[#allocation2 + $0x50] sm:$0xff] %v1032_v24 }
 0x1b1   : > { %v930_v4 = vpop.f32.mrf.mxu2 }
 0x1b2   : > { %v995_v26 = vpop.f32.mrf.mxu3 }
 0x1b3   : > { %v996_v20 = vadd.f32 %v995_v26, %v930_v4 }
 0x1b5   : > { %v1033_v27 = vadd.f32 %v996_v20, %v855_v25 }
 0x1b7   : > { %1049 = vst [vmem:[#allocation2 + $0x68] sm:$0xff] %v1033_v27 }
 0x1b9   : > { %v933_v30 = vpop.f32.mrf.mxu2 }
 0x1ba   : > { %v998_v32 = vpop.f32.mrf.mxu3 }
 0x1bb   : > { %v999_v33 = vadd.f32 %v998_v32, %v933_v30 }
 0x1bd   : > { %v1034_v29 = vadd.f32 %v999_v33, %v856_v31 }
 0x1bf   : > { %1050 = vst [vmem:[#allocation2 + $0x8] sm:$0xff] %v1034_v29 }
 0x1c1   : > { %v936_v35 = vpop.f32.mrf.mxu2 }
 0x1c2   : > { %v1001_v37 = vpop.f32.mrf.mxu3 }
 0x1c3   : > { %v1002_v18 = vadd.f32 %v1001_v37, %v936_v35 }
 0x1c5   : > { %v1035_v19 = vadd.f32 %v1002_v18, %v857_v36 }
 0x1c7   : > { %1051 = vst [vmem:[#allocation2 + $0x48] sm:$0xff] %v1035_v19 }
 0x1c9   : > { %v939_v34 = vpop.f32.mrf.mxu2 }
 0x1ca   : > { %v1004_v40 = vpop.f32.mrf.mxu3 }
 0x1cb   : > { %v1005_v41 = vadd.f32 %v1004_v40, %v939_v34 }
 0x1cd   : > { %v1036_v38 = vadd.f32 %v1005_v41, %v858_v39 }
 0x1cf   : > { %1052 = vst [vmem:[#allocation2 + $0x40] sm:$0xff] %v1036_v38 }
 0x1d1   : > { %v942_v43 = vpop.f32.mrf.mxu2 }
 0x1d2   : > { %v1007_v45 = vpop.f32.mrf.mxu3 }
 0x1d3   : > { %v1008_v48 = vadd.f32 %v1007_v45, %v942_v43 }
 0x1d5   : > { %v1037_v28 = vadd.f32 %v1008_v48, %v859_v44 }
 0x1d7   : > { %1053 = vst [vmem:[#allocation2 + $0x20] sm:$0xff] %v1037_v28 }
 0x1d9   : > { %v945_v49 = vpop.f32.mrf.mxu2 }
 0x1da   : > { %v1010_v42 = vpop.f32.mrf.mxu3 }
 0x1db   : > { %v1011_v51 = vadd.f32 %v1010_v42, %v945_v49 }
 0x1dd   : > { %v1038_v47 = vadd.f32 %v1011_v51, %v860_v50 }
 0x1df   : > { %1054 = vst [vmem:[#allocation2 + $0x10] sm:$0xff] %v1038_v47 }
 0x1e1   : > { %v948_v53 = vpop.f32.mrf.mxu2 }
 0x1e2   : > { %v1013_v55 = vpop.f32.mrf.mxu3 }
 0x1e3   : > { %v1014_v46 = vadd.f32 %v1013_v55, %v948_v53 }
 0x1e5   : > { %v1039_v57 = vadd.f32 %v1014_v46, %v861_v54 }
 0x1e7   : > { %1055 = vst [vmem:[#allocation2 + $0x38] sm:$0xff] %v1039_v57 }
 0x1e9   : > { %v951_v58 = vpop.f32.mrf.mxu2 }
 0x1ea   : > { %v1016_v56 = vpop.f32.mrf.mxu3 }
 0x1eb   : > { %v1017_v61 = vadd.f32 %v1016_v56, %v951_v58 }
 0x1ed   : > { %v1040_v62 = vadd.f32 %v1017_v61, %v862_v59 }
 0x1ef   : > { %1056 = vst [vmem:[#allocation2 + $0x60] sm:$0xff] %v1040_v62 }
 0x1f1   : > { %v954_v63 = vpop.f32.mrf.mxu2 }
 0x1f2   : > { %v1019_v0 = vpop.f32.mrf.mxu3 }
 0x1f3   : > { %v1020_v60 = vadd.f32 %v1019_v0, %v954_v63 }
 0x1f5   : > { %v1041_v1 = vadd.f32 %v1020_v60, %v863_v52 }
 0x1f7   : > { %1057 = vst [vmem:[#allocation2 + $0x70] sm:$0xff] %v1041_v1 }
 0x1f9   : > { %v957_v2 = vpop.f32.mrf.mxu2 }
 0x1fa   : > { %v1022_v6 = vpop.f32.mrf.mxu3 }
 0x1fb   : > { %v1023_v7 = vadd.f32 %v1022_v6, %v957_v2 }
 0x1fd   : > { %v1042_v8 = vadd.f32 %v1023_v7, %v864_v3 }
 0x1ff   : > { %1058 = vst [vmem:[#allocation2 + $0x78] sm:$0xff] %v1042_v8 }
 0x201   : > { %v960_v9 = vpop.f32.mrf.mxu2 }
 0x202   : > { %v1025_v11 = vpop.f32.mrf.mxu3 }
 0x203   : > { %v1026_v12 = vadd.f32 %v1025_v11, %v960_v9  ;;  %1063 = sbr.rel (%p1266_p2) target bundleno = 539 (0x21b), region = 64 }
 0x205   : > { %v1043_v13 = vadd.f32 %v1026_v12, %v865_v5 }
 0x207   : > { %1059 = vst [vmem:[#allocation2 + $0x28] sm:$0xff] %v1043_v13 }
 0x208   : > { %v1064_v10 = vld [vmem:[#allocation2 + $0x30] sm:$0xff]  ;;  %v1428_v15 = vld [vmem:[%s2060_s4] ss:$0 sm:$0xff]  ;;  %v1066_v17 = vld [vmem:[#allocation2 + $0x58] sm:$0xff] }
 0x209   : > { %v1065_v16 = vld [vmem:[#allocation2] sm:$0xff]  ;;  %v1067_v14 = vld [vmem:[#allocation2 + $0x18] sm:$0xff]  ;;  %v1084_v21 = vadd.f32 %v1428_v15, %v1064_v10  ;;  %v1086_v23 = vadd.f32 %v1428_v15, %v1066_v17  ;;  %v1068_v24 = vld [vmem:[#allocation2 + $0x50] sm:$0xff] }
 0x20a   : > { %v1085_v22 = vadd.f32 %v1428_v15, %v1065_v16  ;;  %v1069_v4 = vld [vmem:[#allocation2 + $0x68] sm:$0xff]  ;;  %v1087_v25 = vadd.f32 %v1428_v15, %v1067_v14  ;;  %v1088_v20 = vadd.f32 %v1428_v15, %v1068_v24  ;;  %v1072_v31 = vld [vmem:[#allocation2 + $0x40] sm:$0xff]  ;;  %v1074_v35 = vld [vmem:[#allocation2 + $0x10] sm:$0xff] }
 0x20b   : > { %v1070_v26 = vld [vmem:[#allocation2 + $0x8] sm:$0xff]  ;;  %1100 = vst [vmem:[#allocation11] sm:$0xff] %v1084_v21  ;;  %v1089_v30 = vadd.f32 %v1428_v15, %v1069_v4  ;;  %v1073_v33 = vld [vmem:[#allocation2 + $0x20] sm:$0xff]  ;;  %v1092_v36 = vadd.f32 %v1428_v15, %v1072_v31  ;;  %v1075_v37 = vld [vmem:[#allocation2 + $0x38] sm:$0xff]  ;;  %v1094_v34 = vadd.f32 %v1428_v15, %v1074_v35 }
 0x20c   : > { %v1071_v27 = vld [vmem:[#allocation2 + $0x48] sm:$0xff]  ;;  %1101 = vst [vmem:[#allocation11 + $0x8] sm:$0xff] %v1085_v22  ;;  %v1090_v32 = vadd.f32 %v1428_v15, %v1070_v26  ;;  %v1093_v18 = vadd.f32 %v1428_v15, %v1073_v33  ;;  %v1076_v19 = vld [vmem:[#allocation2 + $0x60] sm:$0xff]  ;;  %v1077_v39 = vld [vmem:[#allocation2 + $0x70] sm:$0xff]  ;;  %v1095_v40 = vadd.f32 %v1428_v15, %v1075_v37 }
 0x20d   : > { %1102 = vst [vmem:[#allocation11 + $0x10] sm:$0xff] %v1086_v23  ;;  %v1091_v29 = vadd.f32 %v1428_v15, %v1071_v27  ;;  %v1078_v41 = vld [vmem:[#allocation2 + $0x78] sm:$0xff]  ;;  %v1096_v38 = vadd.f32 %v1428_v15, %v1076_v19  ;;  %v1097_v44 = vadd.f32 %v1428_v15, %v1077_v39 }
 0x20e   : > { %1103 = vst [vmem:[#allocation11 + $0x18] sm:$0xff] %v1087_v25  ;;  %v1079_v43 = vld [vmem:[#allocation2 + $0x28] sm:$0xff]  ;;  %v1098_v45 = vadd.f32 %v1428_v15, %v1078_v41 }
 0x20f   : > { %1104 = vst [vmem:[#allocation11 + $0x20] sm:$0xff] %v1088_v20  ;;  %v1099_v48 = vadd.f32 %v1428_v15, %v1079_v43 }
 0x210   : > { %1105 = vst [vmem:[#allocation11 + $0x28] sm:$0xff] %v1089_v30 }
 0x211   : > { %1106 = vst [vmem:[#allocation11 + $0x30] sm:$0xff] %v1090_v32 }
 0x212   : > { %1107 = vst [vmem:[#allocation11 + $0x38] sm:$0xff] %v1091_v29 }
 0x213   : > { %1108 = vst [vmem:[#allocation11 + $0x40] sm:$0xff] %v1092_v36 }
 0x214   : > { %1109 = vst [vmem:[#allocation11 + $0x48] sm:$0xff] %v1093_v18 }
 0x215   : > { %1110 = vst [vmem:[#allocation11 + $0x50] sm:$0xff] %v1094_v34 }
 0x216   : > { %1111 = vst [vmem:[#allocation11 + $0x58] sm:$0xff] %v1095_v40 }
 0x217   : > { %1112 = vst [vmem:[#allocation11 + $0x60] sm:$0xff] %v1096_v38 }
 0x218   : > { %1113 = vst [vmem:[#allocation11 + $0x68] sm:$0xff] %v1097_v44 }
 0x219   : > { %1114 = vst [vmem:[#allocation11 + $0x70] sm:$0xff] %v1098_v45 }
 0x21a   : > { %1115 = vst [vmem:[#allocation11 + $0x78] sm:$0xff] %v1099_v48 }
 0x21b PF: > { %p1304_p3 = scmp.eq.s32.totalorder %s1753_s27, 1  ;;  %s1126_s9 = sshll.u32 %s2061_s5, 4  ;;  %s1127_s9 = int_to_ptr.hbm [resolvable:$true] %s1126_s9 }
 0x21c   : > { %s1648_s10 = smov [#allocation11]   ;;  %s1649_s17 = smov 128  }
 0x21d   : > { %s1124_s11 = sshll.u32 %s1648_s10, 4  ;;  %s1650_s25 = smov 8   ;;  %s1125_s11 = int_to_ptr.vmem [resolvable:$true] %s1124_s11 }
 0x21e   : > { %1284 = dma.vmem_to_hbm [thread:$0]  (%p1304_p3), %s1125_s11, 2048, %s1127_s9, [#allocation5], %s1649_s17, %s1649_s17, %s1650_s25  }
 0x21f   : > { %1614 = dma.done.wait (%p1304_p3), [#allocation5], 2048  }
 0x220   : > { %1616 = vsyncadd (%p1304_p3), [#allocation5], 4294965248 }
 0x221 PF: > { %s2079_s28 = sld [smem:[#allocation17_spill]]  ;;  %s2083_s18 = smov %s1623_s19 }
 0x222   : > { %s2080_s30 = sld [smem:[#allocation16_spill]]  ;;  %s2085_s21 = smov %s1635_s22 }
 0x223   : > { %s2081_s20 = sld [smem:[#allocation19_spill]] }
 0x224   : > { %s2082_s27 = sld [smem:[#allocation18_spill]] }
 0x227   : > { %s23_s23 = sadd.s32 1, %s2079_s28  }
 0x228   : > { %p20_p4 = scmp.ge.s32.totalorder %s23_s23, 4   ;;  %s2084_s19 = smov %s2080_s30 }
 0x22a   : > { %s2086_s22 = smov %s2082_s27  ;;  %22 = sbr.rel (!%p20_p4) target bundleno = 11 (0xb), region = 116 }
 0x22f   :  { %1143 = vsyncpa [#allocation4], 1 }
 0x230   :  { %1145 = vsyncpa [#allocation4 + $0x1], 1 }
 0x231   :  { %1146 = vsyncpa [#allocation7], 1 }
 0x232   :  { %1148 = vsyncpa [#allocation7 + $0x1], 1 }
 0x233   :  { %1149 = vsyncpa [#allocation10], 1 }
 0x234   :  { %1151 = vsyncpa [#allocation10 + $0x1], 1 }
 0x235   :  { %1152 = vsyncpa [#allocation5], 1 }
 0x236   :  { %1154 = vsyncpa [#allocation5 + $0x1], 1 }

</bundles_post_ra>
